<compile_context>
chip_gen: v7x
topology: tpu7x:2x2x1
jax: 0.10.0
libtpu: 0.0.40
codegen_flags: <defaults>
</compile_context>

<pallas_src>
import functools
import itertools
from math import sqrt

import numpy as np
import jax
import jax.numpy as jnp
from jax.experimental import pallas as pl
from jax.experimental.pallas import tpu as pltpu


_VMEM_LIMIT = 48 * 1024 * 1024   # < 64 MiB physical on v7x, > default scoped


def _round_up(x, m):
    return -(-x // m) * m


# ----------------------------------------------------------------------------
# Pallas kernel 1: tiled matmul + bias (+ optional ReLU)
#   bf16 operands on the MXU, f32 accumulation, f32 epilogue.
# ----------------------------------------------------------------------------
def _mm_bias_kernel(a_ref, b_ref, bias_ref, o_ref, acc_ref, *, relu):
    k = pl.program_id(2)

    @pl.when(k == 0)
    def _():
        acc_ref[...] = jnp.zeros_like(acc_ref)

    acc_ref[...] += jnp.dot(a_ref[...], b_ref[...],
                            preferred_element_type=jnp.float32)

    @pl.when(k == pl.num_programs(2) - 1)
    def _():
        r = acc_ref[...] + bias_ref[...]          # (tm,tn) + (1,tn) broadcast
        if relu:
            r = jnp.maximum(r, 0.0)
        o_ref[...] = r.astype(o_ref.dtype)


def _pick_tiles(M, K, N):
    """Adaptive tiles.  Rules: a block dim is either a multiple of (16,128)
    for (sublane, lane) or equal to the full (padded) array dim."""
    # M tile
    if M <= 256:
        tm, Mp = M, M                       # single block, full dim
    elif M <= 1024:
        tm = 128
        Mp = _round_up(M, tm)
    else:
        tm = 256
        Mp = _round_up(M, tm)
    # K tile: use one full-K block whenever it is small enough (no K padding).
    if K <= 1152:
        tk, Kp = K, K
    elif K % 768 == 0:
        tk, Kp = 768, K
    elif K % 512 == 0:
        tk, Kp = 512, K
    else:
        tk = 512
        Kp = _round_up(K, tk)
    # N tile: single full-N block for the sizes in this model (<= 512).
    if N <= 512:
        tn, Np = N, N
    elif N % 256 == 0:
        tn, Np = 256, N
    elif N % 128 == 0:
        tn, Np = 128, N
    else:
        tn = 128
        Np = _round_up(N, tn)
    return tm, tk, tn, Mp, Kp, Np


def matmul_bias(a, b, bias, *, relu=False, out_dtype=jnp.float32):
    """a: (M,K), b: (K,N) [bf16 weights], bias: (N,) -> (M,N) out_dtype."""
    M, K = a.shape
    _, N = b.shape
    tm, tk, tn, Mp, Kp, Np = _pick_tiles(M, K, N)

    a = a.astype(jnp.bfloat16)
    b = b.astype(jnp.bfloat16)
    bias = bias.astype(jnp.float32).reshape(1, N)
    if Mp != M or Kp != K:
        a = jnp.pad(a, ((0, Mp - M), (0, Kp - K)))
    if Kp != K or Np != N:
        b = jnp.pad(b, ((0, Kp - K), (0, Np - N)))
    if Np != N:
        bias = jnp.pad(bias, ((0, 0), (0, Np - N)))

    out = pl.pallas_call(
        functools.partial(_mm_bias_kernel, relu=relu),
        out_shape=jax.ShapeDtypeStruct((Mp, Np), out_dtype),
        grid_spec=pltpu.PrefetchScalarGridSpec(
            num_scalar_prefetch=0,
            grid=(Mp // tm, Np // tn, Kp // tk),
            in_specs=[
                pl.BlockSpec((tm, tk), lambda i, j, k: (i, k)),
                pl.BlockSpec((tk, tn), lambda i, j, k: (k, j)),
                pl.BlockSpec((1, tn), lambda i, j, k: (0, j)),
            ],
            out_specs=pl.BlockSpec((tm, tn), lambda i, j, k: (i, j)),
            scratch_shapes=[pltpu.VMEM((tm, tn), jnp.float32)],
        ),
        compiler_params=pltpu.CompilerParams(
            dimension_semantics=("parallel", "parallel", "arbitrary"),
            vmem_limit_bytes=_VMEM_LIMIT),
    )(a, b, bias)
    if Mp != M or Np != N:
        out = out[:M, :N]
    return out


# ----------------------------------------------------------------------------
# Pallas kernel 2: direct 3x3 stride-1 convolution.
#   The whole (spatially padded, row-flattened) per-image activation stays
#   resident in VMEM; the 9 taps are static row-offset slices that feed 9
#   accumulated MXU matmuls.  No im2col tensor ever touches HBM.
# ----------------------------------------------------------------------------
def _conv3x3s1_kernel(x_ref, w_ref, b_ref, o_ref, *, wp, cin, m_rows, relu):
    # x_ref: (1, HW_ext, Cin) bf16, flattened padded image rows
    # w_ref: (9*Cin, Cout)    bf16, tap-major / channel-minor im2col weights
    # b_ref: (1, Cout)        f32
    # o_ref: (1, m_rows, Cout)
    cout = o_ref.shape[-1]
    acc = jnp.zeros((m_rows, cout), jnp.float32)
    t = 0
    for di in range(3):
        for dj in range(3):
            off = di * wp + dj                       # static element offset
            lhs = x_ref[0, off:off + m_rows, :]      # (m_rows, Cin)
            rhs = w_ref[t * cin:(t + 1) * cin, :]    # (Cin,   Cout)
            acc = acc + jnp.dot(lhs, rhs, preferred_element_type=jnp.float32)
            t += 1
    r = acc + b_ref[...]
    if relu:
        r = jnp.maximum(r, 0.0)
    o_ref[0] = r.astype(o_ref.dtype)


def conv3x3_s1(x, wm, bias, *, padding, relu=False, out_dtype=jnp.bfloat16):
    """3x3, stride-1 conv.  x: NHWC, wm: (9*Cin, Cout) im2col weights."""
    N, H, W, Cin = x.shape
    Cout = wm.shape[1]
    Hp = H + 2 * padding
    Wp = W + 2 * padding
    Ho, Wo = Hp - 2, Wp - 2

    # full-width trick: compute Wp columns per output row (last 2 per row are
    # garbage and sliced off below); consecutive flattened output pixels then
    # map to consecutive flattened input rows, so each tap is one contiguous
    # row-offset slice.
    m_rows = _round_up(Ho * Wp, 16)
    off_max = 2 * Wp + 2
    rows_needed = off_max + m_rows
    deficit = rows_needed - Hp * Wp
    extra_rows = (_round_up(deficit, Wp) // Wp) if deficit > 0 else 0

    x_pad = jnp.pad(x.astype(jnp.bfloat16),
                    ((0, 0), (padding, padding + extra_rows),
                     (padding, padding), (0, 0)))
    hw_ext = (Hp + extra_rows) * Wp
    x_flat = x_pad.reshape(N, hw_ext, Cin)
    wm = wm.astype(jnp.bfloat16)
    bias = bias.astype(jnp.float32).reshape(1, Cout)

    out = pl.pallas_call(
        functools.partial(_conv3x3s1_kernel, wp=Wp, cin=Cin,
                          m_rows=m_rows, relu=relu),
        out_shape=jax.ShapeDtypeStruct((N, m_rows, Cout), out_dtype),
        grid_spec=pltpu.PrefetchScalarGridSpec(
            num_scalar_prefetch=0,
            grid=(N,),
            in_specs=[
                pl.BlockSpec((1, hw_ext, Cin), lambda n: (n, 0, 0)),
                pl.BlockSpec((9 * Cin, Cout), lambda n: (0, 0)),
                pl.BlockSpec((1, Cout), lambda n: (0, 0)),
            ],
            out_specs=pl.BlockSpec((1, m_rows, Cout), lambda n: (n, 0, 0)),
        ),
        compiler_params=pltpu.CompilerParams(
            dimension_semantics=("parallel",),
            vmem_limit_bytes=_VMEM_LIMIT),
    )(x_flat, wm, bias)

    out = out[:, :Ho * Wp, :].reshape(N, Ho, Wp, Cout)[:, :, :Wo, :]
    return out


# ----------------------------------------------------------------------------
# im2col (only used for strided 3x3 convs, where inflation is ~1-2.3x, and
# for the tiny Cin=3 stem) + unified conv dispatcher.
# ----------------------------------------------------------------------------
def _im2col(x, kh, kw, stride, padding):
    N, H, W, C = x.shape
    if padding > 0:
        x = jnp.pad(x, ((0, 0), (padding, padding), (padding, padding), (0, 0)))
    Hp, Wp = x.shape[1], x.shape[2]
    Ho = (Hp - kh) // stride + 1
    Wo = (Wp - kw) // stride + 1
    cols = []
    for di in range(kh):
        for dj in range(kw):
            patch = jax.lax.slice(
                x,
                (0, di, dj, 0),
                (N, di + (Ho - 1) * stride + 1, dj + (Wo - 1) * stride + 1, C),
                (1, stride, stride, 1))
            cols.append(patch)
    return jnp.concatenate(cols, axis=-1), Ho, Wo


def conv2d(x, prm, *, relu=False, out_dtype=jnp.bfloat16):
    """x: NHWC bf16 activation; prm: dict with pre-converted im2col weights."""
    k, cin = prm["k"], prm["cin"]
    stride, pad = prm["stride"], prm["pad"]
    wm, b = prm["wm"], prm["b"]
    N = x.shape[0]
    Cout = wm.shape[1]

    if k == 1 and pad == 0:
        xs = x[:, ::stride, ::stride, :]
        Ho, Wo = xs.shape[1], xs.shape[2]
        y = matmul_bias(xs.reshape(-1, cin), wm, b, relu=relu,
                        out_dtype=out_dtype)
        return y.reshape(N, Ho, Wo, Cout)

    if k == 3 and stride == 1 and cin >= 16:
        try:
            return conv3x3_s1(x, wm, b, padding=pad, relu=relu,
                              out_dtype=out_dtype)
        except Exception:
            pass  # safety net: fall back to the im2col path below

    patches, Ho, Wo = _im2col(x.astype(jnp.bfloat16), k, k, stride, pad)
    y = matmul_bias(patches.reshape(-1, k * k * cin), wm, b, relu=relu,
                    out_dtype=out_dtype)
    return y.reshape(N, Ho, Wo, Cout)


# ----------------------------------------------------------------------------
# Pallas kernel 3: box decode (scale_back_batch) + per-box softmax
# ----------------------------------------------------------------------------
def _decode_kernel(b_ref, s_ref, d_ref, box_ref, prob_ref, *, scale_xy, scale_wh):
    b = b_ref[0]           # (4, T)  rows = [cx, cy, w, h] raw predictions
    d = d_ref[...]         # (4, T)  rows = [cx, cy, w, h] default boxes
    x = scale_xy * b[0:1] * d[2:3] + d[0:1]
    y = scale_xy * b[1:2] * d[3:4] + d[1:2]
    w = jnp.exp(scale_wh * b[2:3]) * d[2:3]
    h = jnp.exp(scale_wh * b[3:4]) * d[3:4]
    box_ref[0] = jnp.concatenate(
        [x - 0.5 * w, y - 0.5 * h, x + 0.5 * w, y + 0.5 * h], axis=0)

    s = s_ref[0]           # (L, T) logits, softmax over labels (axis 0)
    m = jnp.max(s, axis=0, keepdims=True)
    e = jnp.exp(s - m)
    inv = pl.reciprocal(jnp.sum(e, axis=0, keepdims=True), approx=True)
    prob_ref[0] = e * inv


def decode_boxes_scores(locs, confs, dboxes_xywh, *, scale_xy=0.1, scale_wh=0.2):
    """locs: (N,4,nb), confs: (N,L,nb), dboxes_xywh: (4,nb) ->
       boxes (N,nb,4) ltrb, probs (N,nb,L)."""
    N, _, nb = locs.shape
    L = confs.shape[1]
    tile = min(_round_up(nb, 512), 4096)     # lane-dense, whole image per step
    nbp = _round_up(nb, tile)
    locs_p = jnp.pad(locs.astype(jnp.float32), ((0, 0), (0, 0), (0, nbp - nb)))
    confs_p = jnp.pad(confs.astype(jnp.float32), ((0, 0), (0, 0), (0, nbp - nb)))
    d_p = jnp.pad(dboxes_xywh, ((0, 0), (0, nbp - nb)))

    boxes, probs = pl.pallas_call(
        functools.partial(_decode_kernel, scale_xy=scale_xy, scale_wh=scale_wh),
        out_shape=(jax.ShapeDtypeStruct((N, 4, nbp), jnp.float32),
                   jax.ShapeDtypeStruct((N, L, nbp), jnp.float32)),
        grid_spec=pltpu.PrefetchScalarGridSpec(
            num_scalar_prefetch=0,
            grid=(N, nbp // tile),
            in_specs=[
                pl.BlockSpec((1, 4, tile), lambda n, t: (n, 0, t)),
                pl.BlockSpec((1, L, tile), lambda n, t: (n, 0, t)),
                pl.BlockSpec((4, tile), lambda n, t: (0, t)),
            ],
            out_specs=(pl.BlockSpec((1, 4, tile), lambda n, t: (n, 0, t)),
                       pl.BlockSpec((1, L, tile), lambda n, t: (n, 0, t))),
        ),
        compiler_params=pltpu.CompilerParams(
            dimension_semantics=("parallel", "parallel"),
            vmem_limit_bytes=_VMEM_LIMIT),
    )(locs_p, confs_p, d_p)

    boxes = jnp.transpose(boxes[:, :, :nb], (0, 2, 1))   # (N, nb, 4)
    probs = jnp.transpose(probs[:, :, :nb], (0, 2, 1))   # (N, nb, L)
    return boxes, probs


# ----------------------------------------------------------------------------
# Default boxes (DefaultBoxes analogue, built for the actual feature shapes)
# ----------------------------------------------------------------------------
def build_dboxes(feat_shapes, num_defaults, aspect_ratios, scales):
    boxes = []
    for idx, (H, W) in enumerate(feat_shapes):
        sk1, sk2 = scales[idx], scales[idx + 1]
        sk3 = sqrt(sk1 * sk2)
        all_sizes = [(sk1, sk1), (sk3, sk3)]
        for alpha in aspect_ratios[idx]:
            w, h = sk1 * sqrt(alpha), sk1 / sqrt(alpha)
            all_sizes.append((w, h))
            all_sizes.append((h, w))
        assert len(all_sizes) == num_defaults[idx]
        for (w, h) in all_sizes:
            for i, j in itertools.product(range(H), range(W)):
                cx, cy = (j + 0.5) / W, (i + 0.5) / H
                boxes.append((cx, cy, w, h))
    d = np.clip(np.asarray(boxes, dtype=np.float32), 0.0, 1.0)
    return jnp.asarray(d.T)   # (4, nboxes)


# ----------------------------------------------------------------------------
# Parameter construction (deterministic xavier-uniform, zero bias).
# Weights are stored ALREADY converted to im2col matrices (kH*kW*Cin, Cout),
# cast to bf16, with the loc/conf head weights fused per level.
# ----------------------------------------------------------------------------
def _xavier(key, cout, cin, kh, kw):
    fan_in, fan_out = cin * kh * kw, cout * kh * kw
    bound = sqrt(6.0 / (fan_in + fan_out))
    return jax.random.uniform(key, (cout, cin, kh, kw), jnp.float32,
                              -bound, bound)


def _to_im2col(w):
    cout, cin, kh, kw = w.shape
    return jnp.transpose(w, (2, 3, 1, 0)).reshape(kh * kw * cin, cout)


def make_params(key, label_num=81, strides=(3, 3, 2, 2, 2, 2)):
    keys = iter(jax.random.split(key, 64))

    def conv(cout, cin, k, stride, pad):
        w = _xavier(next(keys), cout, cin, k, k)
        return dict(wm=_to_im2col(w).astype(jnp.bfloat16),
                    b=jnp.zeros((cout,), jnp.float32),
                    k=k, cin=cin, stride=stride, pad=pad)

    p = {}
    # backbone stub (ResNet34 not provided): 3 -> 64 -> 256 channels, 3x3 pad 1
    p["bb"] = [conv(64, 3, 3, 1, 1), conv(256, 64, 3, 1, 1)]

    out_chan = [256, 512, 512, 256, 256, 256]
    blk_cfg = [
        (out_chan[0], 256, out_chan[1], 1, strides[2]),
        (out_chan[1], 256, out_chan[2], 1, strides[3]),
        (out_chan[2], 128, out_chan[3], 1, strides[4]),
        (out_chan[3], 128, out_chan[4], 0, strides[5]),
        (out_chan[4], 128, out_chan[5], 0, 1),
    ]
    p["blocks"] = []
    for cin, mid, cout, pad, st in blk_cfg:
        p["blocks"].append((conv(mid, cin, 1, 1, 0),
                            conv(cout, mid, 3, st, pad)))

    num_defaults = [4, 6, 6, 6, 4, 4]
    p["heads"] = []
    for nd, oc in zip(num_defaults, out_chan):
        lw = _xavier(next(keys), nd * 4, oc, 3, 3)
        cw = _xavier(next(keys), nd * label_num, oc, 3, 3)
        w = jnp.concatenate([lw, cw], axis=0)        # fused loc+conf head
        p["heads"].append(dict(
            wm=_to_im2col(w).astype(jnp.bfloat16),
            b=jnp.zeros((w.shape[0],), jnp.float32),
            k=3, cin=oc, stride=strides[0], pad=1, nd=nd))
    p["label_num"] = label_num
    p["strides"] = strides
    p["num_defaults"] = num_defaults
    return p


# ----------------------------------------------------------------------------
# Full forward pass
# ----------------------------------------------------------------------------
def ssd_r34_forward(x_nchw, params, max_output=200):
    label_num = params["label_num"]

    x = jnp.transpose(x_nchw, (0, 2, 3, 1)).astype(jnp.bfloat16)   # NCHW->NHWC

    # backbone stub
    for prm in params["bb"]:
        x = conv2d(x, prm, relu=True, out_dtype=jnp.bfloat16)
    src = [x]

    # additional feature blocks (1x1 + strided 3x3, both with ReLU)
    for c1, c2 in params["blocks"]:
        x = conv2d(x, c1, relu=True, out_dtype=jnp.bfloat16)
        x = conv2d(x, c2, relu=True, out_dtype=jnp.bfloat16)
        src.append(x)

    # loc / conf heads (fused into a single matmul per feature map, f32 out)
    locs_list, confs_list, feat_shapes = [], [], []
    for s, h in zip(src, params["heads"]):
        nd = h["nd"]
        y = conv2d(s, h, relu=False, out_dtype=jnp.float32)
        N, Ho, Wo, _ = y.shape
        feat_shapes.append((Ho, Wo))
        l = y[..., :nd * 4]
        c = y[..., nd * 4:]
        l = jnp.transpose(l, (0, 3, 1, 2)).reshape(N, 4, -1)
        c = jnp.transpose(c, (0, 3, 1, 2)).reshape(N, label_num, -1)
        locs_list.append(l)
        confs_list.append(c)
    locs = jnp.concatenate(locs_list, axis=2)     # (N, 4, nboxes)
    confs = jnp.concatenate(confs_list, axis=2)   # (N, label_num, nboxes)

    # default boxes matching the actual (synthetic) feature shapes
    scales = [21 / 300, 45 / 300, 99 / 300, 153 / 300, 207 / 300,
              261 / 300, 315 / 300]
    aspect_ratios = [[2], [2, 3], [2, 3], [2, 3], [2], [2]]
    dboxes_xywh = build_dboxes(feat_shapes, params["num_defaults"],
                               aspect_ratios, scales)

    boxes, probs = decode_boxes_scores(locs, confs, dboxes_xywh,
                                       scale_xy=0.1, scale_wh=0.2)

    # TODO(synk): class-wise NMS (decode_single) is data-dependent; approximate
    # final selection with per-image top-k over the best non-background score.
    best = jnp.max(probs[:, :, 1:], axis=-1)
    labels = jnp.argmax(probs[:, :, 1:], axis=-1) + 1
    k = min(max_output, boxes.shape[1])
    top_scores, top_idx = jax.lax.top_k(best, k)
    out_boxes = jnp.take_along_axis(boxes, top_idx[:, :, None], axis=1)
    out_labels = jnp.take_along_axis(labels, top_idx, axis=1)
    return out_boxes, out_labels, top_scores, locs, confs


# ----------------------------------------------------------------------------
if __name__ == "__main__":
    key = jax.random.PRNGKey(0)
    pkey, xkey = jax.random.split(key)
    params = make_params(pkey, label_num=81, strides=(3, 3, 2, 2, 2, 2))

    # Smallest input whose feature pyramid keeps every level >= 1x1:
    # 49x49 backbone feature -> 25 -> 13 -> 7 -> 3 -> 1 spatial sizes.
    x = jax.random.normal(xkey, (2, 3, 49, 49), dtype=jnp.float32)

    out_boxes, out_labels, out_scores, locs, confs = ssd_r34_forward(x, params)
    jax.block_until_ready((out_boxes, out_labels, out_scores))

    assert out_boxes.shape == (2, 200, 4)
    assert out_labels.shape == (2, 200)
    assert out_scores.shape == (2, 200)
    assert bool(jnp.all(jnp.isfinite(out_boxes)))
    assert bool(jnp.all(jnp.isfinite(out_scores)))
    print("KERNEL_OK")
</pallas_src>

<mosaic_0001>
module attributes {stable_mosaic.version = 11 : i64} {
  func.func @_mm_bias_kernel(%arg0: i32, %arg1: i32, %arg2: i32, %arg3: memref<256x27xbf16, #tpu.memory_space<vmem>>, %arg4: memref<27x64xbf16, #tpu.memory_space<vmem>>, %arg5: memref<1x64xf32, #tpu.memory_space<vmem>>, %arg6: memref<256x64xbf16, #tpu.memory_space<vmem>>, %arg7: memref<256x64xf32, #tpu.memory_space<vmem>>) attributes {dimension_semantics = [#tpu.dimension_semantics<parallel>, #tpu.dimension_semantics<parallel>, #tpu.dimension_semantics<arbitrary>], iteration_bounds = array<i64: 19, 1, 1>, scalar_prefetch = 0 : i64, scratch_operands = 1 : i64, tpu.core_type = #tpu.core_type<tc>, window_params = [{transform_indices = @transform_0, window_bounds = array<i64: 256, 27>}, {transform_indices = @transform_1, window_bounds = array<i64: 27, 64>}, {transform_indices = @transform_2, window_bounds = array<i64: 1, 64>}, {transform_indices = @transform_3, window_bounds = array<i64: 256, 64>}]} {
    %c0_i32 = arith.constant 0 : i32
    %0 = arith.cmpi eq, %arg2, %c0_i32 : i32
    %1 = arith.extui %0 : i1 to i32
    %c0_i32_0 = arith.constant 0 : i32
    %2 = arith.cmpi ne, %1, %c0_i32_0 : i32
    scf.if %2 {
      %cst_10 = arith.constant 0.000000e+00 : f32
      %12 = vector.broadcast %cst_10 : f32 to vector<256x64xf32>
      %c0_11 = arith.constant 0 : index
      %c0_12 = arith.constant 0 : index
      %13 = vector.load %arg7[%c0_11, %c0_12] : memref<256x64xf32, #tpu.memory_space<vmem>>, vector<256x64xf32>
      tpu.vector_store %arg7[%c0_11, %c0_12], %12 {strides = array<i32>} : memref<256x64xf32, #tpu.memory_space<vmem>>, vector<256x64xf32>,
    } else {
    }
    %c0 = arith.constant 0 : index
    %c0_1 = arith.constant 0 : index
    %3 = vector.load %arg7[%c0, %c0_1] : memref<256x64xf32, #tpu.memory_space<vmem>>, vector<256x64xf32>
    %c0_2 = arith.constant 0 : index
    %c0_3 = arith.constant 0 : index
    %4 = vector.load %arg3[%c0_2, %c0_3] : memref<256x27xbf16, #tpu.memory_space<vmem>>, vector<256x27xbf16>
    %c0_4 = arith.constant 0 : index
    %c0_5 = arith.constant 0 : index
    %5 = vector.load %arg4[%c0_4, %c0_5] : memref<27x64xbf16, #tpu.memory_space<vmem>>, vector<27x64xbf16>
    %cst = arith.constant dense<0.000000e+00> : vector<256x64xf32>
    %6 = tpu.matmul %4, %5, %cst {dimension_numbers = #tpu.dot_dimension_numbers<[1], [0], [0], [1], [0, 0, 1, 1], [], []>} : vector<256x27xbf16>, vector<27x64xbf16>, vector<256x64xf32> -> vector<256x64xf32>
    %7 = arith.addf %3, %6 : vector<256x64xf32>
    %c0_6 = arith.constant 0 : index
    %c0_7 = arith.constant 0 : index
    %8 = vector.load %arg7[%c0_6, %c0_7] : memref<256x64xf32, #tpu.memory_space<vmem>>, vector<256x64xf32>
    tpu.vector_store %arg7[%c0_6, %c0_7], %7 {strides = array<i32>} : memref<256x64xf32, #tpu.memory_space<vmem>>, vector<256x64xf32>,
    %c0_i32_8 = arith.constant 0 : i32
    %9 = arith.cmpi eq, %arg2, %c0_i32_8 : i32
    %10 = arith.extui %9 : i1 to i32
    %c0_i32_9 = arith.constant 0 : i32
    %11 = arith.cmpi ne, %10, %c0_i32_9 : i32
    scf.if %11 {
      %c0_10 = arith.constant 0 : index
      %c0_11 = arith.constant 0 : index
      %12 = vector.load %arg7[%c0_10, %c0_11] : memref<256x64xf32, #tpu.memory_space<vmem>>, vector<256x64xf32>
      %c0_12 = arith.constant 0 : index
      %c0_13 = arith.constant 0 : index
      %13 = vector.load %arg5[%c0_12, %c0_13] : memref<1x64xf32, #tpu.memory_space<vmem>>, vector<1x64xf32>
      %14 = vector.broadcast %13 : vector<1x64xf32> to vector<256x64xf32>
      %15 = arith.addf %12, %14 : vector<256x64xf32>
      %cst_14 = arith.constant 0.000000e+00 : f32
      %16 = vector.broadcast %cst_14 : f32 to vector<256x64xf32>
      %17 = arith.maximumf %15, %16 : vector<256x64xf32>
      %18 = arith.truncf %17 : vector<256x64xf32> to vector<256x64xbf16>
      %c0_15 = arith.constant 0 : index
      %c0_16 = arith.constant 0 : index
      %19 = vector.load %arg6[%c0_15, %c0_16] : memref<256x64xbf16, #tpu.memory_space<vmem>>, vector<256x64xbf16>
      tpu.vector_store %arg6[%c0_15, %c0_16], %18 {strides = array<i32>} : memref<256x64xbf16, #tpu.memory_space<vmem>>, vector<256x64xbf16>,
    } else {
    }
    return
  }
  func.func @transform_0(%arg0: i32, %arg1: i32, %arg2: i32) -> (i32, i32) {
    %c0_i32 = arith.constant 0 : i32
    return %arg0, %arg2 : i32, i32
  }
  func.func @transform_1(%arg0: i32, %arg1: i32, %arg2: i32) -> (i32, i32) {
    %c0_i32 = arith.constant 0 : i32
    return %arg2, %arg1 : i32, i32
  }
  func.func @transform_2(%arg0: i32, %arg1: i32, %arg2: i32) -> (i32, i32) {
    %c0_i32 = arith.constant 0 : i32
    %c0_i32_0 = arith.constant 0 : i32
    return %c0_i32, %arg1 : i32, i32
  }
  func.func @transform_3(%arg0: i32, %arg1: i32, %arg2: i32) -> (i32, i32) {
    %c0_i32 = arith.constant 0 : i32
    return %arg0, %arg1 : i32, i32
  }
}

</mosaic_0001>

<bundles_post_ra>
// kernel: tpu_custom_call.1
= control target key start
LH: loop header
LB: loop body
LE: loop exit
PB: predicated region body
PF: predicated region fallthrough
CT: control target
= control target key end

     0   :  { %s1376_s12 = smov 0   ;;  %s1378_s13 = smov 0   ;;  %s1636_s0 = inlined_call_operand.vmem [shape: bf16[4864,27], index: 0, kind: input, shape index: {}]   ;;  %s1637_s1 = inlined_call_operand.vmem [shape: bf16[27,64], index: 1, kind: input, shape index: {}]   ;;  %s1638_s2 = inlined_call_operand.vmem [shape: f32[1,64], index: 2, kind: input, shape index: {}]   ;;  %s1639_s3 = inlined_call_operand.vmem [shape: bf16[4864,64], index: 3, kind: output, shape index: {}]  }
   0x1   :  { %s1380_s14 = smov 0  }
   0x2 LB: > { %s32_s15 = sadd.s32 1, %s1348_s13  ;;  %p1122_p0 = scmp.ge.s32.totalorder %s1352_s14, 1  ;;  %s1352_s14 = sphi %s1380_s14, %s13_s14   ;;  %s1348_s13 = sphi %s1378_s13, %s1642_s13   ;;  %s1344_s12 = sphi %s1376_s12, %s1641_s12  }
   0x3   : > { %p34_p1 = scmp.ge.s32.totalorder %s32_s15, 19  ;;  %p188_p2 = scmp.lt.s32.totalorder %s1352_s14, 20 }
   0x5   : > { %s1644_s15 = smov (%p34_p1, %s32_s15), 0  ;;  %p189_p3 = pnand %p1122_p0, %p188_p2 }
   0x6   : > { %v1312_v0 = vld [vmem:[%s1637_s1] sm:$0xff] (!%p189_p3)   ;;  %vm505_vm0 = vcmask (!%p189_p3), 1044480   ;;  %v1313_v1 = vld [vmem:[%s1637_s1 + $0x8] sm:$0x3f] (!%p189_p3)   ;;  %vm506_vm1 = vcmask (!%p189_p3), 1045504   ;;  %s1123_s20 = sshll.u32 (!%p189_p3), %s1344_s12, 5 }
   0x7   : > { %192 = sbr.rel (%p189_p3) target bundleno = 281 (0x119), region = 32  ;;  %1246 = vmatprep.subr.bf16.mxu0 (!%p189_p3), %v1312_v0  ;;  %1282 = vmatprep.subr.bf16.mxu1 (!%p189_p3), %v1312_v0  ;;  %vm264_vm2 = vcmask (!%p189_p3), 523264   ;;  %v1354_v2 = vmov (!%p189_p3), 65535   ;;  %p1405_p4 = scmp.lt.s32.totalorder (!%p189_p3), %s1123_s20, 607  ;;  %v1355_v5 = vmov (!%p189_p3), 0.0   ;;  %vm456_vm3 = vcmask (!%p189_p3), 220160  }
   0x8   : > { %1247 = vmatpush3.bf16.msra.mxu0 (!%p189_p3), %v1312_v0  ;;  %1284 = vmatpush3.bf16.msra.mxu1 (!%p189_p3), %v1312_v0  ;;  %v507_v3 = vsel (!%p189_p3), %vm505_vm0, 4294967295, %v1354_v2  ;;  %267 = vst.msk [vmem:[#allocation2 + $0x10] sm:$0xff] (!%p189_p3), %vm264_vm2, %v1355_v5  ;;  %265 = vst.msk [vmem:[#allocation2] sm:$0xff] (!%p189_p3), %vm264_vm2, %v1355_v5  ;;  %v1498_v50 = vld [vmem:[%s1638_s2] ss:$0 sm:$0xff] (!%p189_p3)  ;;  %vm972_vm4 = vcmask (!%p189_p3), 519168  }
   0x9   : > { %v508_v4 = vsel (!%p189_p3), %vm506_vm1, %v507_v3, 0  ;;  %266 = vst.msk [vmem:[#allocation2 + $0x8] sm:$0xff] (!%p189_p3), %vm264_vm2, %v1355_v5  ;;  %268 = vst.msk [vmem:[#allocation2 + $0x18] sm:$0xff] (!%p189_p3), %vm264_vm2, %v1355_v5 }
   0xa   : > { %269 = vst.msk [vmem:[#allocation2 + $0x20] sm:$0xff] (!%p189_p3), %vm264_vm2, %v1355_v5  ;;  %270 = vst.msk [vmem:[#allocation2 + $0x28] sm:$0xff] (!%p189_p3), %vm264_vm2, %v1355_v5  ;;  %v510_v6 = vand.u32 (!%p189_p3), %v1313_v1, %v508_v4 }
   0xb   : > { %271 = vst.msk [vmem:[#allocation2 + $0x30] sm:$0xff] (!%p189_p3), %vm264_vm2, %v1355_v5  ;;  %272 = vst.msk [vmem:[#allocation2 + $0x38] sm:$0xff] (!%p189_p3), %vm264_vm2, %v1355_v5 }
   0xc   : > { %273 = vst.msk [vmem:[#allocation2 + $0x40] sm:$0xff] (!%p189_p3), %vm264_vm2, %v1355_v5  ;;  %274 = vst.msk [vmem:[#allocation2 + $0x48] sm:$0xff] (!%p189_p3), %vm264_vm2, %v1355_v5  ;;  %1248 = vmatprep.subr.bf16.mxu0 (!%p189_p3), %v510_v6  ;;  %1283 = vmatprep.subr.bf16.mxu1 (!%p189_p3), %v510_v6 }
   0xd   : > { %275 = vst.msk [vmem:[#allocation2 + $0x50] sm:$0xff] (!%p189_p3), %vm264_vm2, %v1355_v5  ;;  %276 = vst.msk [vmem:[#allocation2 + $0x58] sm:$0xff] (!%p189_p3), %vm264_vm2, %v1355_v5  ;;  %1249 = vmatpush3.bf16.msra.mxu0 (!%p189_p3), %v510_v6  ;;  %1285 = vmatpush3.bf16.msra.mxu1 (!%p189_p3), %v510_v6 }
   0xe   : > { %277 = vst.msk [vmem:[#allocation2 + $0x60] sm:$0xff] %vm264_vm2, %v1355_v5  ;;  %278 = vst.msk [vmem:[#allocation2 + $0x68] sm:$0xff] %vm264_vm2, %v1355_v5  ;;  %s1646_s20 = smov (!%p1405_p4, %s1123_s20), 607 }
   0xf   : > { %279 = vst.msk [vmem:[#allocation2 + $0x70] sm:$0xff] %vm264_vm2, %v1355_v5  ;;  %280 = vst.msk [vmem:[#allocation2 + $0x78] sm:$0xff] %vm264_vm2, %v1355_v5  ;;  %s1124_s22 = sshll.u32 %s1646_s20, 2  ;;  %v299_v23 = vld [vmem:[#allocation2 + $0x10] sm:$0xff]  ;;  %v297_v25 = vld [vmem:[#allocation2] sm:$0xff] }
  0x10   : > { %281 = vst.msk [vmem:[#allocation2 + $0x80] sm:$0xff] %vm264_vm2, %v1355_v5  ;;  %282 = vst.msk [vmem:[#allocation2 + $0x88] sm:$0xff] %vm264_vm2, %v1355_v5  ;;  %s1453_s25 = scalar_lea.vmem %s1636_s0, %s1124_s22  ;;  %v300_v28 = vld [vmem:[#allocation2 + $0x18] sm:$0xff]  ;;  %v298_v33 = vld [vmem:[#allocation2 + $0x8] sm:$0xff]  ;;  %s1515_s30 = scalar_lea.vmem %s1639_s3, %s1124_s22 }
  0x11   : > { %283 = vst.msk [vmem:[#allocation2 + $0x90] sm:$0xff] %vm264_vm2, %v1355_v5  ;;  %284 = vst.msk [vmem:[#allocation2 + $0x98] sm:$0xff] %vm264_vm2, %v1355_v5  ;;  %v1314_v7 = vld [vmem:[%s1453_s25] sm:$0xff]   ;;  %v1316_v9 = vld [vmem:[%s1453_s25 + $0x8] sm:$0xff]  }
  0x12   : > { %285 = vst.msk [vmem:[#allocation2 + $0xa0] sm:$0xff] %vm264_vm2, %v1355_v5  ;;  %286 = vst.msk [vmem:[#allocation2 + $0xa8] sm:$0xff] %vm264_vm2, %v1355_v5  ;;  %v1315_v8 = vld [vmem:[%s1453_s25 + $0x40] sm:$0xff]   ;;  %1250 = vmatprep.mubr.msk.bf16.mxu0 %vm456_vm3, %v1314_v7  ;;  %v1317_v10 = vld [vmem:[%s1453_s25 + $0x48] sm:$0xff]  }
  0x13   : > { %287 = vst.msk [vmem:[#allocation2 + $0xb0] sm:$0xff] %vm264_vm2, %v1355_v5  ;;  %288 = vst.msk [vmem:[#allocation2 + $0xb8] sm:$0xff] %vm264_vm2, %v1355_v5  ;;  %1266 = vmatprep.mubr.msk.bf16.mxu1 %vm456_vm3, %v1315_v8  ;;  %1251 = vmatmul.mubr.msk.bf16.vlgmr.msra.gmra.mrb[0].mxu0 %vm456_vm3, %v1316_v9  ;;  %v1318_v11 = vld [vmem:[%s1453_s25 + $0x10] sm:$0xff]   ;;  %v1320_v13 = vld [vmem:[%s1453_s25 + $0x18] sm:$0xff]  }
  0x14   : > { %289 = vst.msk [vmem:[#allocation2 + $0xc0] sm:$0xff] %vm264_vm2, %v1355_v5  ;;  %290 = vst.msk [vmem:[#allocation2 + $0xc8] sm:$0xff] %vm264_vm2, %v1355_v5  ;;  %1267 = vmatmul.mubr.msk.bf16.vlgmr.msra.gmra.mrb[0].mxu1 %vm456_vm3, %v1317_v10  ;;  %v1319_v12 = vld [vmem:[%s1453_s25 + $0x50] sm:$0xff]   ;;  %1254 = vmatprep.mubr.msk.bf16.mxu0 %vm456_vm3, %v1318_v11  ;;  %v1321_v14 = vld [vmem:[%s1453_s25 + $0x58] sm:$0xff]  }
  0x15   : > { %291 = vst.msk [vmem:[#allocation2 + $0xd0] sm:$0xff] %vm264_vm2, %v1355_v5  ;;  %292 = vst.msk [vmem:[#allocation2 + $0xd8] sm:$0xff] %vm264_vm2, %v1355_v5  ;;  %1270 = vmatprep.mubr.msk.bf16.mxu1 %vm456_vm3, %v1319_v12  ;;  %v1322_v15 = vld [vmem:[%s1453_s25 + $0x20] sm:$0xff]   ;;  %v1324_v17 = vld [vmem:[%s1453_s25 + $0x28] sm:$0xff]  }
  0x16   : > { %293 = vst.msk [vmem:[#allocation2 + $0xe0] sm:$0xff] %vm264_vm2, %v1355_v5  ;;  %294 = vst.msk [vmem:[#allocation2 + $0xe8] sm:$0xff] %vm264_vm2, %v1355_v5  ;;  %v1323_v16 = vld [vmem:[%s1453_s25 + $0x60] sm:$0xff]   ;;  %v1325_v18 = vld [vmem:[%s1453_s25 + $0x68] sm:$0xff]  }
  0x17   : > { %295 = vst.msk [vmem:[#allocation2 + $0xf0] sm:$0xff] %vm264_vm2, %v1355_v5  ;;  %296 = vst.msk [vmem:[#allocation2 + $0xf8] sm:$0xff] %vm264_vm2, %v1355_v5  ;;  %v1326_v19 = vld [vmem:[%s1453_s25 + $0x30] sm:$0xff]   ;;  %v1328_v21 = vld [vmem:[%s1453_s25 + $0x38] sm:$0xff]  }
  0x18   : > { %v1327_v20 = vld [vmem:[%s1453_s25 + $0x70] sm:$0xff]   ;;  %v1329_v22 = vld [vmem:[%s1453_s25 + $0x78] sm:$0xff]   ;;  %v313_v27 = vld [vmem:[#allocation2 + $0x80] sm:$0xff] }
  0x19   : > { %v315_v24 = vld [vmem:[#allocation2 + $0x90] sm:$0xff]  ;;  %v316_v32 = vld [vmem:[#allocation2 + $0x98] sm:$0xff]  ;;  %v314_v38 = vld [vmem:[#allocation2 + $0x88] sm:$0xff] }
  0x1a   : > { %v303_v47 = vld [vmem:[#allocation2 + $0x30] sm:$0xff]  ;;  %v301_v49 = vld [vmem:[#allocation2 + $0x20] sm:$0xff]  ;;  %v304_v53 = vld [vmem:[#allocation2 + $0x38] sm:$0xff] }
  0x1b   : > { %1255 = vmatmul.mubr.msk.bf16.gmra.mrb[4].mxu0 %vm456_vm3, %v1320_v13  ;;  %v319_v48 = vld [vmem:[#allocation2 + $0xb0] sm:$0xff]  ;;  %v317_v52 = vld [vmem:[#allocation2 + $0xa0] sm:$0xff]  ;;  %v320_v57 = vld [vmem:[#allocation2 + $0xb8] sm:$0xff] }
  0x1c   : > { %1271 = vmatmul.mubr.msk.bf16.gmra.mrb[4].mxu1 %vm456_vm3, %v1321_v14  ;;  %1258 = vmatprep.mubr.msk.bf16.mxu0 %vm456_vm3, %v1322_v15  ;;  %v302_v58 = vld [vmem:[#allocation2 + $0x28] sm:$0xff] }
  0x1d   : > { %1274 = vmatprep.mubr.msk.bf16.mxu1 %vm456_vm3, %v1323_v16  ;;  %v318_v0 = vld [vmem:[#allocation2 + $0xa8] sm:$0xff] }
  0x23   : > { %1259 = vmatmul.mubr.msk.bf16.gmra.mrb[8].mxu0 %vm456_vm3, %v1324_v17 }
  0x24   : > { %1275 = vmatmul.mubr.msk.bf16.gmra.mrb[8].mxu1 %vm456_vm3, %v1325_v18  ;;  %1262 = vmatprep.mubr.msk.bf16.mxu0 %vm456_vm3, %v1326_v19 }
  0x25   : > { %1278 = vmatprep.mubr.msk.bf16.mxu1 %vm456_vm3, %v1327_v20 }
  0x2b   : > { %1263 = vmatmul.mubr.msk.bf16.gmra.mrb[12].mxu0 %vm456_vm3, %v1328_v21 }
  0x2c   : > { %1279 = vmatmul.mubr.msk.bf16.gmra.mrb[12].mxu1 %vm456_vm3, %v1329_v22 }
  0xe6   : > { %v1252_v26 = vpop.f32.mrb[0].mxu0 }
  0xe7   : > { %v675_v29 = vadd.f32 %v1252_v26, %v299_v23  ;;  %v1268_v30 = vpop.f32.mrb[0].mxu1  ;;  %v546_v31 = vpop.f32.mrb[1].mxu0  ;;  %v307_v26 = vld [vmem:[#allocation2 + $0x50] sm:$0xff] }
  0xe8   : > { %v691_v34 = vadd.f32 %v1268_v30, %v315_v24  ;;  %v673_v35 = vadd.f32 %v546_v31, %v297_v25  ;;  %v610_v36 = vpop.f32.mrb[1].mxu1  ;;  %v1253_v37 = vpop.f32.mrb[2].mxu0  ;;  %v323_v31 = vld [vmem:[#allocation2 + $0xd0] sm:$0xff] }
  0xe9   : > { %708 = vst.msk [vmem:[#allocation2 + $0x10] sm:$0xff] %vm264_vm2, %v675_v29  ;;  %v689_v39 = vadd.f32 %v610_v36, %v313_v27  ;;  %v676_v40 = vadd.f32 %v1253_v37, %v300_v28  ;;  %v1269_v41 = vpop.f32.mrb[2].mxu1  ;;  %v549_v42 = vpop.f32.mrb[3].mxu0 }
  0xea   : > { %724 = vst.msk [vmem:[#allocation2 + $0x90] sm:$0xff] %vm264_vm2, %v691_v34  ;;  %706 = vst.msk [vmem:[#allocation2] sm:$0xff] %vm264_vm2, %v673_v35  ;;  %v692_v43 = vadd.f32 %v1269_v41, %v316_v32  ;;  %v674_v44 = vadd.f32 %v549_v42, %v298_v33  ;;  %v613_v45 = vpop.f32.mrb[3].mxu1  ;;  %v305_v32 = vld [vmem:[#allocation2 + $0x40] sm:$0xff] }
  0xeb   : > { %722 = vst.msk [vmem:[#allocation2 + $0x80] sm:$0xff] %vm264_vm2, %v689_v39  ;;  %709 = vst.msk [vmem:[#allocation2 + $0x18] sm:$0xff] %vm264_vm2, %v676_v40  ;;  %v690_v46 = vadd.f32 %v613_v45, %v314_v38  ;;  %v321_v38 = vld [vmem:[#allocation2 + $0xc0] sm:$0xff]  ;;  %v308_v39 = vld [vmem:[#allocation2 + $0x58] sm:$0xff] }
  0xec   : > { %725 = vst.msk [vmem:[#allocation2 + $0x98] sm:$0xff] %vm264_vm2, %v692_v43  ;;  %707 = vst.msk [vmem:[#allocation2 + $0x8] sm:$0xff] %vm264_vm2, %v674_v44 }
  0xed   : > { %723 = vst.msk [vmem:[#allocation2 + $0x88] sm:$0xff] %vm264_vm2, %v690_v46  ;;  %v324_v46 = vld [vmem:[#allocation2 + $0xd8] sm:$0xff] }
  0xee   : > { %v1256_v51 = vpop.f32.mrb[4].mxu0 }
  0xef   : > { %v679_v54 = vadd.f32 %v1256_v51, %v303_v47  ;;  %v1272_v55 = vpop.f32.mrb[4].mxu1  ;;  %v562_v56 = vpop.f32.mrb[5].mxu0  ;;  %v306_v47 = vld [vmem:[#allocation2 + $0x48] sm:$0xff] }
  0xf0   : > { %v743_v59 = vld [vmem:[#allocation2 + $0x10] sm:$0xff]  ;;  %v695_v60 = vadd.f32 %v1272_v55, %v319_v48  ;;  %v677_v61 = vadd.f32 %v562_v56, %v301_v49  ;;  %v626_v62 = vpop.f32.mrb[5].mxu1  ;;  %v1257_v63 = vpop.f32.mrb[6].mxu0  ;;  %v322_v56 = vld [vmem:[#allocation2 + $0xc8] sm:$0xff] }
  0xf1   : > { %v782_v1 = vadd.f32 %v1498_v50, %v743_v59  ;;  %v759_v2 = vld [vmem:[#allocation2 + $0x90] sm:$0xff]  ;;  %v741_v3 = vld [vmem:[#allocation2] sm:$0xff]  ;;  %712 = vst.msk [vmem:[#allocation2 + $0x30] sm:$0xff] %vm264_vm2, %v679_v54  ;;  %v693_v4 = vadd.f32 %v626_v62, %v317_v52  ;;  %v680_v5 = vadd.f32 %v1257_v63, %v304_v53  ;;  %v1273_v6 = vpop.f32.mrb[6].mxu1  ;;  %v565_v7 = vpop.f32.mrb[7].mxu0 }
  0xf2   : > { %v798_v8 = vadd.f32 %v1498_v50, %v759_v2  ;;  %v780_v9 = vadd.f32 %v1498_v50, %v741_v3  ;;  %v757_v10 = vld [vmem:[#allocation2 + $0x80] sm:$0xff]  ;;  %v744_v11 = vld [vmem:[#allocation2 + $0x18] sm:$0xff]  ;;  %728 = vst.msk [vmem:[#allocation2 + $0xb0] sm:$0xff] %vm264_vm2, %v695_v60  ;;  %710 = vst.msk [vmem:[#allocation2 + $0x20] sm:$0xff] %vm264_vm2, %v677_v61  ;;  %v696_v12 = vadd.f32 %v1273_v6, %v320_v57  ;;  %v629_v14 = vpop.f32.mrb[7].mxu1 }
  0xf3   : > { %v678_v13 = vadd.f32 %v565_v7, %v302_v58  ;;  %v814_v15 = vmax.f32 %v782_v1, 0.0  ;;  %v796_v16 = vadd.f32 %v1498_v50, %v757_v10  ;;  %v783_v17 = vadd.f32 %v1498_v50, %v744_v11  ;;  %v760_v18 = vld [vmem:[#allocation2 + $0x98] sm:$0xff]  ;;  %v742_v19 = vld [vmem:[#allocation2 + $0x8] sm:$0xff]  ;;  %726 = vst.msk [vmem:[#allocation2 + $0xa0] sm:$0xff] %vm264_vm2, %v693_v4  ;;  %713 = vst.msk [vmem:[#allocation2 + $0x38] sm:$0xff] %vm264_vm2, %v680_v5 }
  0xf4   : > { %v694_v20 = vadd.f32 %v629_v14, %v318_v0  ;;  %v830_v21 = vmax.f32 %v798_v8, 0.0  ;;  %v812_v22 = vmax.f32 %v780_v9, 0.0  ;;  %v799_v23 = vadd.f32 %v1498_v50, %v760_v18  ;;  %v758_v25 = vld [vmem:[#allocation2 + $0x88] sm:$0xff]  ;;  %729 = vst.msk [vmem:[#allocation2 + $0xb8] sm:$0xff] %vm264_vm2, %v696_v12 }
  0xf5   : > { %v781_v24 = vadd.f32 %v1498_v50, %v742_v19  ;;  %711 = vst.msk [vmem:[#allocation2 + $0x28] sm:$0xff] %vm264_vm2, %v678_v13  ;;  %v1198_v27 = vpack.c.bf16 %v814_v15, %v814_v15  ;;  %v828_v28 = vmax.f32 %v796_v16, 0.0  ;;  %v815_v29 = vmax.f32 %v783_v17, 0.0  ;;  %v311_v19 = vld [vmem:[#allocation2 + $0x70] sm:$0xff] }
  0xf6   : > { %v797_v30 = vadd.f32 %v1498_v50, %v758_v25  ;;  %727 = vst.msk [vmem:[#allocation2 + $0xa8] sm:$0xff] %vm264_vm2, %v694_v20  ;;  %v1214_v33 = vpack.c.bf16 %v830_v21, %v830_v21  ;;  %v1196_v34 = vpack.c.bf16 %v812_v22, %v812_v22  ;;  %v831_v35 = vmax.f32 %v799_v23, 0.0  ;;  %v1260_v37 = vpop.f32.mrb[8].mxu0  ;;  %v309_v25 = vld [vmem:[#allocation2 + $0x60] sm:$0xff] }
  0xf7   : > { %v813_v36 = vmax.f32 %v781_v24, 0.0  ;;  %975 = vst.msk [vmem:[%s1515_s30 + $0x8] sm:$0xf] %vm972_vm4, %v1198_v27  ;;  %v1212_v40 = vpack.c.bf16 %v828_v28, %v828_v28  ;;  %v1199_v41 = vpack.c.bf16 %v815_v29, %v815_v29  ;;  %v683_v43 = vadd.f32 %v1260_v37, %v307_v26  ;;  %v1276_v44 = vpop.f32.mrb[8].mxu1  ;;  %v578_v45 = vpop.f32.mrb[9].mxu0  ;;  %v327_v24 = vld [vmem:[#allocation2 + $0xf0] sm:$0xff] }
  0xf8   : > { %v829_v42 = vmax.f32 %v797_v30, 0.0  ;;  %991 = vst.msk [vmem:[%s1515_s30 + $0x48] sm:$0xf] %vm972_vm4, %v1214_v33  ;;  %973 = vst.msk [vmem:[%s1515_s30] sm:$0xf] %vm972_vm4, %v1196_v34  ;;  %v1215_v48 = vpack.c.bf16 %v831_v35, %v831_v35  ;;  %v747_v51 = vld [vmem:[#allocation2 + $0x30] sm:$0xff]  ;;  %v699_v52 = vadd.f32 %v1276_v44, %v323_v31  ;;  %v681_v53 = vadd.f32 %v578_v45, %v305_v32 }
  0xf9   : > { %v1197_v49 = vpack.c.bf16 %v813_v36, %v813_v36  ;;  %v642_v54 = vpop.f32.mrb[9].mxu1  ;;  %v1261_v55 = vpop.f32.mrb[10].mxu0  ;;  %989 = vst.msk [vmem:[%s1515_s30 + $0x40] sm:$0xf] %vm972_vm4, %v1212_v40  ;;  %976 = vst.msk [vmem:[%s1515_s30 + $0xc] sm:$0xf] %vm972_vm4, %v1199_v41  ;;  %v786_v58 = vadd.f32 %v1498_v50, %v747_v51 }
  0xfa   : > { %v1213_v57 = vpack.c.bf16 %v829_v42, %v829_v42  ;;  %v763_v59 = vld [vmem:[#allocation2 + $0xb0] sm:$0xff]  ;;  %v745_v60 = vld [vmem:[#allocation2 + $0x20] sm:$0xff]  ;;  %716 = vst.msk [vmem:[#allocation2 + $0x50] sm:$0xff] %vm264_vm2, %v683_v43  ;;  %v697_v61 = vadd.f32 %v642_v54, %v321_v38  ;;  %v684_v62 = vadd.f32 %v1261_v55, %v308_v39  ;;  %v1277_v63 = vpop.f32.mrb[10].mxu1  ;;  %v581_v0 = vpop.f32.mrb[11].mxu0  ;;  %v748_v4 = vld [vmem:[#allocation2 + $0x38] sm:$0xff] }
  0xfb   : > { %992 = vst.msk [vmem:[%s1515_s30 + $0x4c] sm:$0xf] %vm972_vm4, %v1215_v48  ;;  %974 = vst.msk [vmem:[%s1515_s30 + $0x4] sm:$0xf] %vm972_vm4, %v1197_v49  ;;  %v802_v1 = vadd.f32 %v1498_v50, %v763_v59  ;;  %v784_v2 = vadd.f32 %v1498_v50, %v745_v60  ;;  %v761_v3 = vld [vmem:[#allocation2 + $0xa0] sm:$0xff]  ;;  %v700_v5 = vadd.f32 %v1277_v63, %v324_v46  ;;  %v645_v7 = vpop.f32.mrb[11].mxu1 }
  0xfc   : > { %732 = vst.msk [vmem:[#allocation2 + $0xd0] sm:$0xff] %vm264_vm2, %v699_v52  ;;  %714 = vst.msk [vmem:[#allocation2 + $0x40] sm:$0xff] %vm264_vm2, %v681_v53  ;;  %v682_v6 = vadd.f32 %v581_v0, %v306_v47  ;;  %v818_v8 = vmax.f32 %v786_v58, 0.0  ;;  %v800_v9 = vadd.f32 %v1498_v50, %v761_v3  ;;  %v787_v10 = vadd.f32 %v1498_v50, %v748_v4  ;;  %v764_v11 = vld [vmem:[#allocation2 + $0xb8] sm:$0xff]  ;;  %v746_v12 = vld [vmem:[#allocation2 + $0x28] sm:$0xff] }
  0xfd   : > { %990 = vst.msk [vmem:[%s1515_s30 + $0x44] sm:$0xf] %vm972_vm4, %v1213_v57  ;;  %v698_v13 = vadd.f32 %v645_v7, %v322_v56  ;;  %v834_v14 = vmax.f32 %v802_v1, 0.0  ;;  %v816_v15 = vmax.f32 %v784_v2, 0.0  ;;  %v803_v16 = vadd.f32 %v1498_v50, %v764_v11  ;;  %v762_v18 = vld [vmem:[#allocation2 + $0xa8] sm:$0xff]  ;;  %v325_v31 = vld [vmem:[#allocation2 + $0xe0] sm:$0xff] }
  0xfe   : > { %730 = vst.msk [vmem:[#allocation2 + $0xc0] sm:$0xff] %vm264_vm2, %v697_v61  ;;  %717 = vst.msk [vmem:[#allocation2 + $0x58] sm:$0xff] %vm264_vm2, %v684_v62  ;;  %v785_v17 = vadd.f32 %v1498_v50, %v746_v12  ;;  %v1202_v20 = vpack.c.bf16 %v818_v8, %v818_v8  ;;  %v832_v21 = vmax.f32 %v800_v9, 0.0  ;;  %v819_v22 = vmax.f32 %v787_v10, 0.0  ;;  %v1264_v30 = vpop.f32.mrb[12].mxu0  ;;  %v312_v32 = vld [vmem:[#allocation2 + $0x78] sm:$0xff] }
  0xff   : > { %733 = vst.msk [vmem:[#allocation2 + $0xd8] sm:$0xff] %vm264_vm2, %v700_v5  ;;  %715 = vst.msk [vmem:[#allocation2 + $0x48] sm:$0xff] %vm264_vm2, %v682_v6  ;;  %v801_v23 = vadd.f32 %v1498_v50, %v762_v18  ;;  %v1218_v26 = vpack.c.bf16 %v834_v14, %v834_v14  ;;  %v1200_v27 = vpack.c.bf16 %v816_v15, %v816_v15  ;;  %v835_v28 = vmax.f32 %v803_v16, 0.0  ;;  %v1280_v37 = vpop.f32.mrb[12].mxu1  ;;  %v594_v38 = vpop.f32.mrb[13].mxu0  ;;  %v328_v39 = vld [vmem:[#allocation2 + $0xf8] sm:$0xff] }
 0x100   : > { %731 = vst.msk [vmem:[#allocation2 + $0xc8] sm:$0xff] %vm264_vm2, %v698_v13  ;;  %v817_v29 = vmax.f32 %v785_v17, 0.0  ;;  %v1216_v33 = vpack.c.bf16 %v832_v21, %v832_v21  ;;  %v1203_v34 = vpack.c.bf16 %v819_v22, %v819_v22  ;;  %v687_v36 = vadd.f32 %v1264_v30, %v311_v19  ;;  %v310_v40 = vld [vmem:[#allocation2 + $0x68] sm:$0xff]  ;;  %v658_v46 = vpop.f32.mrb[13].mxu1  ;;  %v1265_v47 = vpop.f32.mrb[14].mxu0 }
 0x101   : > { %979 = vst.msk [vmem:[%s1515_s30 + $0x18] sm:$0xf] %vm972_vm4, %v1202_v20  ;;  %v833_v35 = vmax.f32 %v801_v23, 0.0  ;;  %995 = vst.msk [vmem:[%s1515_s30 + $0x58] sm:$0xf] %vm972_vm4, %v1218_v26  ;;  %v1219_v41 = vpack.c.bf16 %v835_v28, %v835_v28  ;;  %v751_v43 = vld [vmem:[#allocation2 + $0x50] sm:$0xff]  ;;  %v703_v44 = vadd.f32 %v1280_v37, %v327_v24  ;;  %v685_v45 = vadd.f32 %v594_v38, %v309_v25 }
 0x102   : > { %977 = vst.msk [vmem:[%s1515_s30 + $0x10] sm:$0xf] %vm972_vm4, %v1200_v27  ;;  %v1201_v42 = vpack.c.bf16 %v817_v29, %v817_v29  ;;  %v326_v48 = vld [vmem:[#allocation2 + $0xe8] sm:$0xff]  ;;  %993 = vst.msk [vmem:[%s1515_s30 + $0x50] sm:$0xf] %vm972_vm4, %v1216_v33  ;;  %v790_v51 = vadd.f32 %v1498_v50, %v751_v43  ;;  %v701_v54 = vadd.f32 %v658_v46, %v325_v31  ;;  %v1281_v56 = vpop.f32.mrb[14].mxu1 }
 0x103   : > { %980 = vst.msk [vmem:[%s1515_s30 + $0x1c] sm:$0xf] %vm972_vm4, %v1203_v34  ;;  %v1217_v49 = vpack.c.bf16 %v833_v35, %v833_v35  ;;  %v767_v52 = vld [vmem:[#allocation2 + $0xd0] sm:$0xff]  ;;  %v749_v53 = vld [vmem:[#allocation2 + $0x40] sm:$0xff]  ;;  %v688_v55 = vadd.f32 %v1265_v47, %v312_v32  ;;  %v597_v57 = vpop.f32.mrb[15].mxu0  ;;  %v704_v62 = vadd.f32 %v1281_v56, %v328_v39  ;;  %v661_v0 = vpop.f32.mrb[15].mxu1 }
 0x104   : > { %720 = vst.msk [vmem:[#allocation2 + $0x70] sm:$0xff] %vm264_vm2, %v687_v36  ;;  %v806_v58 = vadd.f32 %v1498_v50, %v767_v52  ;;  %v788_v59 = vadd.f32 %v1498_v50, %v749_v53  ;;  %736 = vst.msk [vmem:[#allocation2 + $0xf0] sm:$0xff] %vm264_vm2, %v703_v44  ;;  %v686_v63 = vadd.f32 %v597_v57, %v310_v40  ;;  %v822_v1 = vmax.f32 %v790_v51, 0.0 }
 0x105   : > { %996 = vst.msk [vmem:[%s1515_s30 + $0x5c] sm:$0xf] %vm972_vm4, %v1219_v41  ;;  %978 = vst.msk [vmem:[%s1515_s30 + $0x14] sm:$0xf] %vm972_vm4, %v1201_v42  ;;  %v765_v60 = vld [vmem:[#allocation2 + $0xc0] sm:$0xff]  ;;  %v752_v61 = vld [vmem:[#allocation2 + $0x58] sm:$0xff]  ;;  %v702_v6 = vadd.f32 %v661_v0, %v326_v48 }
 0x106   : > { %718 = vst.msk [vmem:[#allocation2 + $0x60] sm:$0xff] %vm264_vm2, %v685_v45  ;;  %v804_v2 = vadd.f32 %v1498_v50, %v765_v60  ;;  %v791_v3 = vadd.f32 %v1498_v50, %v752_v61  ;;  %v768_v4 = vld [vmem:[#allocation2 + $0xd8] sm:$0xff]  ;;  %v750_v5 = vld [vmem:[#allocation2 + $0x48] sm:$0xff]  ;;  %734 = vst.msk [vmem:[#allocation2 + $0xe0] sm:$0xff] %vm264_vm2, %v701_v54  ;;  %v838_v7 = vmax.f32 %v806_v58, 0.0  ;;  %v820_v8 = vmax.f32 %v788_v59, 0.0 }
 0x107   : > { %994 = vst.msk [vmem:[%s1515_s30 + $0x54] sm:$0xf] %vm972_vm4, %v1217_v49  ;;  %v807_v9 = vadd.f32 %v1498_v50, %v768_v4  ;;  %v789_v10 = vadd.f32 %v1498_v50, %v750_v5  ;;  %v766_v11 = vld [vmem:[#allocation2 + $0xc8] sm:$0xff]  ;;  %v1206_v12 = vpack.c.bf16 %v822_v1, %v822_v1 }
 0x108   : > { %721 = vst.msk [vmem:[#allocation2 + $0x78] sm:$0xff] %vm264_vm2, %v688_v55  ;;  %737 = vst.msk [vmem:[#allocation2 + $0xf8] sm:$0xff] %vm264_vm2, %v704_v62  ;;  %v836_v13 = vmax.f32 %v804_v2, 0.0  ;;  %v823_v14 = vmax.f32 %v791_v3, 0.0  ;;  %v805_v15 = vadd.f32 %v1498_v50, %v766_v11  ;;  %v1222_v16 = vpack.c.bf16 %v838_v7, %v838_v7 }
 0x109   : > { %719 = vst.msk [vmem:[#allocation2 + $0x68] sm:$0xff] %vm264_vm2, %v686_v63  ;;  %735 = vst.msk [vmem:[#allocation2 + $0xe8] sm:$0xff] %vm264_vm2, %v702_v6  ;;  %v1204_v17 = vpack.c.bf16 %v820_v8, %v820_v8  ;;  %v839_v18 = vmax.f32 %v807_v9, 0.0  ;;  %v821_v19 = vmax.f32 %v789_v10, 0.0 }
 0x10a   : > { %983 = vst.msk [vmem:[%s1515_s30 + $0x28] sm:$0xf] %vm972_vm4, %v1206_v12  ;;  %v1220_v20 = vpack.c.bf16 %v836_v13, %v836_v13  ;;  %v1207_v21 = vpack.c.bf16 %v823_v14, %v823_v14  ;;  %v837_v22 = vmax.f32 %v805_v15, 0.0  ;;  %999 = vst.msk [vmem:[%s1515_s30 + $0x68] sm:$0xf] %vm972_vm4, %v1222_v16 }
 0x10b   : > { %981 = vst.msk [vmem:[%s1515_s30 + $0x20] sm:$0xf] %vm972_vm4, %v1204_v17  ;;  %v1223_v23 = vpack.c.bf16 %v839_v18, %v839_v18  ;;  %v1205_v24 = vpack.c.bf16 %v821_v19, %v821_v19  ;;  %v755_v25 = vld [vmem:[#allocation2 + $0x70] sm:$0xff] }
 0x10c   : > { %997 = vst.msk [vmem:[%s1515_s30 + $0x60] sm:$0xf] %vm972_vm4, %v1220_v20  ;;  %984 = vst.msk [vmem:[%s1515_s30 + $0x2c] sm:$0xf] %vm972_vm4, %v1207_v21  ;;  %v1221_v26 = vpack.c.bf16 %v837_v22, %v837_v22  ;;  %v794_v27 = vadd.f32 %v1498_v50, %v755_v25  ;;  %v771_v28 = vld [vmem:[#allocation2 + $0xf0] sm:$0xff] }
 0x10d   : > { %v753_v29 = vld [vmem:[#allocation2 + $0x60] sm:$0xff]  ;;  %1000 = vst.msk [vmem:[%s1515_s30 + $0x6c] sm:$0xf] %vm972_vm4, %v1223_v23  ;;  %982 = vst.msk [vmem:[%s1515_s30 + $0x24] sm:$0xf] %vm972_vm4, %v1205_v24  ;;  %v810_v30 = vadd.f32 %v1498_v50, %v771_v28 }
 0x10e   : > { %v792_v31 = vadd.f32 %v1498_v50, %v753_v29  ;;  %v769_v32 = vld [vmem:[#allocation2 + $0xe0] sm:$0xff]  ;;  %998 = vst.msk [vmem:[%s1515_s30 + $0x64] sm:$0xf] %vm972_vm4, %v1221_v26  ;;  %v826_v34 = vmax.f32 %v794_v27, 0.0 }
 0x10f   : > { %v756_v33 = vld [vmem:[#allocation2 + $0x78] sm:$0xff]  ;;  %v808_v35 = vadd.f32 %v1498_v50, %v769_v32  ;;  %v842_v39 = vmax.f32 %v810_v30, 0.0 }
 0x110   : > { %v795_v36 = vadd.f32 %v1498_v50, %v756_v33  ;;  %v772_v37 = vld [vmem:[#allocation2 + $0xf8] sm:$0xff]  ;;  %v754_v38 = vld [vmem:[#allocation2 + $0x68] sm:$0xff]  ;;  %v824_v40 = vmax.f32 %v792_v31, 0.0  ;;  %v1210_v44 = vpack.c.bf16 %v826_v34, %v826_v34 }
 0x111   : > { %v811_v41 = vadd.f32 %v1498_v50, %v772_v37  ;;  %v793_v42 = vadd.f32 %v1498_v50, %v754_v38  ;;  %v770_v43 = vld [vmem:[#allocation2 + $0xe8] sm:$0xff]  ;;  %v840_v45 = vmax.f32 %v808_v35, 0.0  ;;  %v1226_v48 = vpack.c.bf16 %v842_v39, %v842_v39 }
 0x112   : > { %v827_v46 = vmax.f32 %v795_v36, 0.0  ;;  %v809_v47 = vadd.f32 %v1498_v50, %v770_v43  ;;  %v1208_v49 = vpack.c.bf16 %v824_v40, %v824_v40  ;;  %987 = vst.msk [vmem:[%s1515_s30 + $0x38] sm:$0xf] %vm972_vm4, %v1210_v44 }
 0x113   : > { %v843_v51 = vmax.f32 %v811_v41, 0.0  ;;  %v825_v52 = vmax.f32 %v793_v42, 0.0  ;;  %v1224_v53 = vpack.c.bf16 %v840_v45, %v840_v45  ;;  %1003 = vst.msk [vmem:[%s1515_s30 + $0x78] sm:$0xf] %vm972_vm4, %v1226_v48 }
 0x114   : > { %v1211_v54 = vpack.c.bf16 %v827_v46, %v827_v46  ;;  %v841_v55 = vmax.f32 %v809_v47, 0.0  ;;  %985 = vst.msk [vmem:[%s1515_s30 + $0x30] sm:$0xf] %vm972_vm4, %v1208_v49 }
 0x115   : > { %v1227_v56 = vpack.c.bf16 %v843_v51, %v843_v51  ;;  %v1209_v57 = vpack.c.bf16 %v825_v52, %v825_v52  ;;  %1001 = vst.msk [vmem:[%s1515_s30 + $0x70] sm:$0xf] %vm972_vm4, %v1224_v53 }
 0x116   : > { %988 = vst.msk [vmem:[%s1515_s30 + $0x3c] sm:$0xf] %vm972_vm4, %v1211_v54  ;;  %v1225_v50 = vpack.c.bf16 %v841_v55, %v841_v55 }
 0x117   : > { %1004 = vst.msk [vmem:[%s1515_s30 + $0x7c] sm:$0xf] %vm972_vm4, %v1227_v56  ;;  %986 = vst.msk [vmem:[%s1515_s30 + $0x34] sm:$0xf] %vm972_vm4, %v1209_v57 }
 0x118   : > { %1002 = vst.msk [vmem:[%s1515_s30 + $0x74] sm:$0xf] %vm972_vm4, %v1225_v50 }
 0x119 PF: > { %s13_s14 = sadd.s32 1, %s1352_s14   ;;  %s1641_s12 = smov %s1348_s13 }
 0x11a   : > { %p10_p5 = scmp.ge.s32.totalorder %s13_s14, 21   ;;  %s1642_s13 = smov %s1644_s15 }
 0x11c   :  { %12 = sbr.rel (!%p10_p5) target bundleno = 2 (0x2), region = 76 }

</bundles_post_ra>
